<compile_context>
chip_gen: v6e
topology: v6e:2x2x1
jax: 0.10.0
libtpu: 0.0.40
codegen_flags: <defaults>
</compile_context>

<pallas_src>
import functools

import numpy as np
import jax
import jax.numpy as jnp
from jax import lax
from jax.experimental import pallas as pl
from jax.experimental.pallas import tpu as pltpu


def _stft_kernel(basis_ref, xa_ref, xb_ref, out_ref, *, ratio):
    """One (batch, frame-tile) step of the STFT.

    basis_ref : VMEM f32[2*n_freq_pad, n_fft]   stacked [cos; -sin] DFT basis
    xa_ref    : VMEM f32[1, hop, f_tile]        chunk columns [j*F, (j+1)*F)
    xb_ref    : VMEM f32[1, hop, 128]           halo (only ratio-1 cols used)
    out_ref   : VMEM f32[1, 2*n_freq_pad, f_tile]
    """
    xa = xa_ref[0]                                   # (hop, f_tile)
    xb = xb_ref[0]                                   # (hop, 128)
    # frames^T[i*hop + k, m] = x_padded[(j*f_tile + m + i) * hop + k]
    parts = [xa]
    for i in range(1, ratio):
        parts.append(jnp.concatenate([xa[:, i:], xb[:, :i]], axis=-1))
    frames_t = jnp.concatenate(parts, axis=0)        # (n_fft, f_tile)
    out_ref[0] = jnp.dot(basis_ref[...], frames_t,
                         preferred_element_type=jnp.float32)


@functools.lru_cache(maxsize=None)
def _dft_basis(n_fft: int, n_freq_pad: int) -> np.ndarray:
    """Stacked one-sided DFT basis [cos; -sin], rows padded to n_freq_pad."""
    n_freq = n_fft // 2 + 1
    k = (np.arange(n_freq, dtype=np.int64)[:, None]
         * np.arange(n_fft, dtype=np.int64)[None, :]) % n_fft
    ang = (2.0 * np.pi / n_fft) * k.astype(np.float64)
    basis = np.zeros((2 * n_freq_pad, n_fft), np.float32)
    basis[:n_freq, :] = np.cos(ang).astype(np.float32)
    basis[n_freq_pad:n_freq_pad + n_freq, :] = (-np.sin(ang)).astype(np.float32)
    return basis


@functools.partial(jax.jit, static_argnames=("n_fft", "frames_per_tile"))
def stft_pallas(waveform: jax.Array, n_fft: int, *,
                frames_per_tile: int = 2048) -> jax.Array:
    """torch.stft(waveform, n_fft, return_complex=True) with default args."""
    squeeze = waveform.ndim == 1
    if squeeze:
        waveform = waveform[None, :]
    assert waveform.ndim == 2, "waveform must be (T,) or (B, T)"
    B, T = waveform.shape
    assert n_fft % 32 == 0, "kernel requires n_fft divisible by 32"

    hop = n_fft // 4                        # torch default hop_length
    ratio = n_fft // hop                    # = 4
    n_freq = n_fft // 2 + 1                 # onesided
    n_freq_pad = 8 * pl.cdiv(n_freq, 8)     # sublane-aligned output rows
    pad = n_fft // 2                        # center=True

    x = waveform.astype(jnp.float32)
    xp = jnp.pad(x, ((0, 0), (pad, pad)), mode="reflect")
    t_pad = T + 2 * pad
    n_frames = 1 + (t_pad - n_fft) // hop

    # ---- frame-tile selection: multiples of 128, VMEM-budgeted --------------
    def step_vmem(ft):
        basis_b = 2 * (2 * n_freq_pad) * n_fft * 4      # double-buffered basis
        xa_b = 2 * hop * ft * 4
        xb_b = 2 * hop * 128 * 4
        out_b = 2 * (2 * n_freq_pad) * ft * 4
        temps = 2 * n_fft * ft * 4                      # frames_t + shifted slices
        return basis_b + xa_b + xb_b + out_b + temps

    budget = 30 * 1024 * 1024
    blocks = pl.cdiv(n_frames, 128)
    f_blocks = max(1, min(frames_per_tile // 128, blocks))
    while f_blocks > 1 and step_vmem(128 * f_blocks) > budget:
        f_blocks -= 1
    if B == 1 and blocks >= 2:
        # Keep >= 2 parallel grid steps so both TCs are used on megacore parts.
        f_blocks = min(f_blocks, pl.cdiv(blocks, 2))
    n_tiles = pl.cdiv(blocks, f_blocks)
    f_blocks = pl.cdiv(blocks, n_tiles)     # rebalance -> minimal frame padding
    f_tile = 128 * f_blocks
    n_frames_pad = n_tiles * f_tile
    n_chunks = n_frames_pad + 128           # one extra 128-chunk halo block

    # Hop-chunk the padded waveform, chunks on the lane axis:
    #   xc[b, k, c] = x_padded[b, c*hop + k]
    xp = jnp.pad(xp, ((0, 0), (0, n_chunks * hop - t_pad)))
    xc = xp.reshape(B, n_chunks, hop).transpose(0, 2, 1)    # (B, hop, n_chunks)

    basis = jnp.asarray(_dft_basis(n_fft, n_freq_pad))      # (2*n_freq_pad, n_fft)

    vmem_limit = int(min(48 * 1024 * 1024,
                         max(24 * 1024 * 1024, 1.5 * step_vmem(f_tile))))

    kernel = functools.partial(_stft_kernel, ratio=ratio)
    halo_stride = f_tile // 128

    out = pl.pallas_call(
        kernel,
        out_shape=jax.ShapeDtypeStruct((B, 2 * n_freq_pad, n_frames_pad),
                                       jnp.float32),
        grid=(B, n_tiles),
        in_specs=[
            # Resident stacked DFT basis (grid-invariant).
            pl.BlockSpec((2 * n_freq_pad, n_fft), lambda b, j: (0, 0)),
            # Current f_tile chunk columns.
            pl.BlockSpec((1, hop, f_tile), lambda b, j: (b, 0, j)),
            # 128-wide halo block right after the current tile.
            pl.BlockSpec((1, hop, 128),
                         lambda b, j: (b, 0, (j + 1) * halo_stride)),
        ],
        out_specs=pl.BlockSpec((1, 2 * n_freq_pad, f_tile),
                               lambda b, j: (b, 0, j)),
        compiler_params=pltpu.CompilerParams(
            dimension_semantics=("parallel", "parallel"),
            vmem_limit_bytes=vmem_limit),
    )(basis, xc, xc)

    re = out[:, :n_freq, :n_frames]
    im = out[:, n_freq_pad:n_freq_pad + n_freq, :n_frames]
    spec = lax.complex(re, im)                               # complex64
    if squeeze:
        spec = spec[0]
    return spec


def stft_forward(x, n_fft, return_sample_rate: bool = False):
    """Mirror of STFT.forward: x = (waveform, sample_rate)."""
    waveform, sample_rate = x
    n_fft_eff = n_fft or sample_rate // 2 ** 5
    spec = stft_pallas(waveform, n_fft_eff)
    if return_sample_rate:
        return (spec, sample_rate)
    return spec


def _reference_stft(waveform: jax.Array, n_fft: int) -> jax.Array:
    """Pure-JAX reference (framing + rfft) matching torch.stft defaults."""
    hop = n_fft // 4
    pad = n_fft // 2
    xp = jnp.pad(waveform.astype(jnp.float32), ((0, 0), (pad, pad)),
                 mode="reflect")
    n_frames = 1 + (xp.shape[-1] - n_fft) // hop
    idx = jnp.arange(n_frames)[:, None] * hop + jnp.arange(n_fft)[None, :]
    frames = xp[:, idx]                              # (B, n_frames, n_fft)
    spec = jnp.fft.rfft(frames, axis=-1)             # exp(-2*pi*i*f*n/N), as torch
    return jnp.swapaxes(spec, -1, -2)                # (B, n_freq, n_frames)


if __name__ == "__main__":
    key = jax.random.PRNGKey(0)
    B, T = 2, 2048
    sample_rate = 8192          # module path n_fft=None -> n_fft = sr // 2**5 = 256
    waveform = jax.random.normal(key, (B, T), dtype=jnp.float32)

    # return_sample_rate=True path, n_fft derived from the sample rate.
    spec, sr = stft_forward((waveform, sample_rate), n_fft=None,
                            return_sample_rate=True)
    spec = jax.block_until_ready(spec)
    assert sr == sample_rate

    n_fft = sample_rate // 2 ** 5
    ref = jax.block_until_ready(_reference_stft(waveform, n_fft))
    assert spec.shape == ref.shape == (B, n_fft // 2 + 1, 1 + T // (n_fft // 4)), spec.shape
    assert jnp.iscomplexobj(spec)

    scale = float(jnp.max(jnp.abs(ref)))
    err = float(jnp.max(jnp.abs(spec - ref)))
    assert err <= 2e-2 * scale + 1e-3, (err, scale)

    # return_sample_rate=False path with explicit n_fft.
    spec2 = jax.block_until_ready(
        stft_forward((waveform, sample_rate), n_fft=n_fft))
    assert spec2.shape == spec.shape
    assert bool(jnp.allclose(spec2, spec))

    print("KERNEL_OK")
</pallas_src>

<mosaic_0001>
module attributes {stable_mosaic.version = 11 : i64} {
  func.func @_stft_kernel(%arg0: i32, %arg1: i32, %arg2: memref<272x256xf32, #tpu.memory_space<vmem>>, %arg3: memref<1x64x128xf32, #tpu.memory_space<vmem>>, %arg4: memref<1x64x128xf32, #tpu.memory_space<vmem>>, %arg5: memref<1x272x128xf32, #tpu.memory_space<vmem>>) attributes {dimension_semantics = [#tpu.dimension_semantics<parallel>, #tpu.dimension_semantics<parallel>], iteration_bounds = array<i64: 2, 1>, scalar_prefetch = 0 : i64, scratch_operands = 0 : i64, tpu.core_type = #tpu.core_type<tc>, window_params = [{pipeline_mode = #tpu.pipeline_mode<synchronous>, transform_indices = @transform_0, window_bounds = array<i64: 272, 256>}, {transform_indices = @transform_1, window_bounds = array<i64: 1, 64, 128>}, {transform_indices = @transform_2, window_bounds = array<i64: 1, 64, 128>}, {transform_indices = @transform_3, window_bounds = array<i64: 1, 272, 128>}]} {
    %c0 = arith.constant 0 : index
    %c0_0 = arith.constant 0 : index
    %c0_1 = arith.constant 0 : index
    %0 = vector.load %arg3[%c0, %c0_0, %c0_1] : memref<1x64x128xf32, #tpu.memory_space<vmem>>, vector<1x64x128xf32>
    %1 = vector.shape_cast %0 : vector<1x64x128xf32> to vector<64x128xf32>
    %c0_2 = arith.constant 0 : index
    %c0_3 = arith.constant 0 : index
    %c0_4 = arith.constant 0 : index
    %2 = vector.load %arg4[%c0_2, %c0_3, %c0_4] : memref<1x64x128xf32, #tpu.memory_space<vmem>>, vector<1x64x128xf32>
    %3 = vector.shape_cast %2 : vector<1x64x128xf32> to vector<64x128xf32>
    %4 = vector.extract_strided_slice %1 {offsets = [0, 1], sizes = [64, 127], strides = [1, 1]} : vector<64x128xf32> to vector<64x127xf32>
    %5 = vector.extract_strided_slice %3 {offsets = [0, 0], sizes = [64, 1], strides = [1, 1]} : vector<64x128xf32> to vector<64x1xf32>
    %6 = tpu.concatenate %4, %5 in 1 : vector<64x127xf32>, vector<64x1xf32> -> vector<64x128xf32>
    %7 = vector.extract_strided_slice %1 {offsets = [0, 2], sizes = [64, 126], strides = [1, 1]} : vector<64x128xf32> to vector<64x126xf32>
    %8 = vector.extract_strided_slice %3 {offsets = [0, 0], sizes = [64, 2], strides = [1, 1]} : vector<64x128xf32> to vector<64x2xf32>
    %9 = tpu.concatenate %7, %8 in 1 : vector<64x126xf32>, vector<64x2xf32> -> vector<64x128xf32>
    %10 = vector.extract_strided_slice %1 {offsets = [0, 3], sizes = [64, 125], strides = [1, 1]} : vector<64x128xf32> to vector<64x125xf32>
    %11 = vector.extract_strided_slice %3 {offsets = [0, 0], sizes = [64, 3], strides = [1, 1]} : vector<64x128xf32> to vector<64x3xf32>
    %12 = tpu.concatenate %10, %11 in 1 : vector<64x125xf32>, vector<64x3xf32> -> vector<64x128xf32>
    %13 = tpu.concatenate %1, %6, %9, %12 in 0 : vector<64x128xf32>, vector<64x128xf32>, vector<64x128xf32>, vector<64x128xf32> -> vector<256x128xf32>
    %c0_5 = arith.constant 0 : index
    %c0_6 = arith.constant 0 : index
    %14 = vector.load %arg2[%c0_5, %c0_6] : memref<272x256xf32, #tpu.memory_space<vmem>>, vector<272x256xf32>
    %cst = arith.constant dense<0.000000e+00> : vector<272x128xf32>
    %15 = tpu.matmul %14, %13, %cst {dimension_numbers = #tpu.dot_dimension_numbers<[1], [0], [0], [1], [0, 0, 1, 1], [], []>} : vector<272x256xf32>, vector<256x128xf32>, vector<272x128xf32> -> vector<272x128xf32>
    %c0_7 = arith.constant 0 : index
    %c0_8 = arith.constant 0 : index
    %c0_9 = arith.constant 0 : index
    %16 = vector.load %arg5[%c0_7, %c0_8, %c0_9] : memref<1x272x128xf32, #tpu.memory_space<vmem>>, vector<1x272x128xf32>
    %17 = vector.shape_cast %16 : vector<1x272x128xf32> to vector<272x128xf32>
    %18 = vector.shape_cast %15 : vector<272x128xf32> to vector<1x272x128xf32>
    tpu.vector_store %arg5[%c0_7, %c0_8, %c0_9], %18 {strides = array<i32>} : memref<1x272x128xf32, #tpu.memory_space<vmem>>, vector<1x272x128xf32>,
    return
  }
  func.func @transform_0(%arg0: i32, %arg1: i32) -> (i32, i32) {
    %c0_i32 = arith.constant 0 : i32
    %c0_i32_0 = arith.constant 0 : i32
    %c0_i32_1 = arith.constant 0 : i32
    return %c0_i32, %c0_i32_0 : i32, i32
  }
  func.func @transform_1(%arg0: i32, %arg1: i32) -> (i32, i32, i32) {
    %c0_i32 = arith.constant 0 : i32
    %c0_i32_0 = arith.constant 0 : i32
    return %arg0, %c0_i32, %arg1 : i32, i32, i32
  }
  func.func @transform_2(%arg0: i32, %arg1: i32) -> (i32, i32, i32) {
    %c1_i32 = arith.constant 1 : i32
    %0 = arith.addi %arg1, %c1_i32 : i32
    %c1_i32_0 = arith.constant 1 : i32
    %1 = arith.muli %0, %c1_i32_0 : i32
    %c0_i32 = arith.constant 0 : i32
    %c0_i32_1 = arith.constant 0 : i32
    return %arg0, %c0_i32, %1 : i32, i32, i32
  }
  func.func @transform_3(%arg0: i32, %arg1: i32) -> (i32, i32, i32) {
    %c0_i32 = arith.constant 0 : i32
    %c0_i32_0 = arith.constant 0 : i32
    return %arg0, %c0_i32, %arg1 : i32, i32, i32
  }
}

</mosaic_0001>

<bundles_post_ra>
// kernel: custom-call
= control target key start
LH: loop header
LB: loop body
LE: loop exit
PB: predicated region body
PF: predicated region fallthrough
CT: control target
= control target key end

     0   :  { %s862_s0 = inlined_call_operand.vmem [shape: f32[2,129,33], index: 0, kind: input, shape index: {}]   ;;  %s863_s2 = inlined_call_operand.vmem [shape: c64[2,129,33], index: 2, kind: output, shape index: {}]   ;;  %s864_s1 = inlined_call_operand.vmem [shape: f32[2,129,33], index: 1, kind: input, shape index: {}]  }
   0x1   :  { %v5_v0 = vld [vmem:[%s862_s0] sm:$0xff]  ;;  %v306_v1 = vld [vmem:[%s862_s0 + $0x8] sm:$0xff]  ;;  %v308_v2 = vld [vmem:[%s862_s0 + $0x10] sm:$0xff] }
   0x2   :  { %6 = vst [vmem:[%s863_s2] sm:$0xff] %v5_v0  ;;  %307 = vst [vmem:[%s863_s2 + $0x8] sm:$0xff] %v306_v1  ;;  %v310_v3 = vld [vmem:[%s862_s0 + $0x18] sm:$0xff]  ;;  %v312_v4 = vld [vmem:[%s862_s0 + $0x20] sm:$0xff] }
   0x3   :  { %309 = vst [vmem:[%s863_s2 + $0x10] sm:$0xff] %v308_v2  ;;  %v314_v5 = vld [vmem:[%s862_s0 + $0x28] sm:$0xff]  ;;  %311 = vst [vmem:[%s863_s2 + $0x18] sm:$0xff] %v310_v3  ;;  %v316_v6 = vld [vmem:[%s862_s0 + $0x30] sm:$0xff] }
   0x4   :  { %313 = vst [vmem:[%s863_s2 + $0x20] sm:$0xff] %v312_v4  ;;  %315 = vst [vmem:[%s863_s2 + $0x28] sm:$0xff] %v314_v5  ;;  %v318_v7 = vld [vmem:[%s862_s0 + $0x38] sm:$0xff]  ;;  %v320_v8 = vld [vmem:[%s862_s0 + $0x40] sm:$0xff] }
   0x5   :  { %317 = vst [vmem:[%s863_s2 + $0x30] sm:$0xff] %v316_v6  ;;  %319 = vst [vmem:[%s863_s2 + $0x38] sm:$0xff] %v318_v7  ;;  %v322_v9 = vld [vmem:[%s862_s0 + $0x48] sm:$0xff]  ;;  %v324_v10 = vld [vmem:[%s862_s0 + $0x50] sm:$0xff] }
   0x6   :  { %321 = vst [vmem:[%s863_s2 + $0x40] sm:$0xff] %v320_v8  ;;  %v326_v11 = vld [vmem:[%s862_s0 + $0x58] sm:$0xff]  ;;  %323 = vst [vmem:[%s863_s2 + $0x48] sm:$0xff] %v322_v9  ;;  %v328_v12 = vld [vmem:[%s862_s0 + $0x60] sm:$0xff] }
   0x7   :  { %325 = vst [vmem:[%s863_s2 + $0x50] sm:$0xff] %v324_v10  ;;  %327 = vst [vmem:[%s863_s2 + $0x58] sm:$0xff] %v326_v11  ;;  %v330_v13 = vld [vmem:[%s862_s0 + $0x68] sm:$0xff]  ;;  %v332_v14 = vld [vmem:[%s862_s0 + $0x70] sm:$0xff] }
   0x8   :  { %329 = vst [vmem:[%s863_s2 + $0x60] sm:$0xff] %v328_v12  ;;  %331 = vst [vmem:[%s863_s2 + $0x68] sm:$0xff] %v330_v13  ;;  %v334_v15 = vld [vmem:[%s862_s0 + $0x78] sm:$0xff]  ;;  %v336_v16 = vld [vmem:[%s862_s0 + $0x80] sm:$0xff] }
   0x9   :  { %333 = vst [vmem:[%s863_s2 + $0x70] sm:$0xff] %v332_v14  ;;  %v338_v17 = vld [vmem:[%s862_s0 + $0x88] sm:$0xff]  ;;  %335 = vst [vmem:[%s863_s2 + $0x78] sm:$0xff] %v334_v15  ;;  %v340_v18 = vld [vmem:[%s862_s0 + $0x90] sm:$0xff] }
   0xa   :  { %337 = vst [vmem:[%s863_s2 + $0x80] sm:$0xff] %v336_v16  ;;  %339 = vst [vmem:[%s863_s2 + $0x88] sm:$0xff] %v338_v17  ;;  %v342_v19 = vld [vmem:[%s862_s0 + $0x98] sm:$0xff]  ;;  %v344_v20 = vld [vmem:[%s862_s0 + $0xa0] sm:$0xff] }
   0xb   :  { %341 = vst [vmem:[%s863_s2 + $0x90] sm:$0xff] %v340_v18  ;;  %343 = vst [vmem:[%s863_s2 + $0x98] sm:$0xff] %v342_v19  ;;  %v346_v21 = vld [vmem:[%s862_s0 + $0xa8] sm:$0xff]  ;;  %v348_v22 = vld [vmem:[%s862_s0 + $0xb0] sm:$0xff] }
   0xc   :  { %345 = vst [vmem:[%s863_s2 + $0xa0] sm:$0xff] %v344_v20  ;;  %v350_v23 = vld [vmem:[%s862_s0 + $0xb8] sm:$0xff]  ;;  %347 = vst [vmem:[%s863_s2 + $0xa8] sm:$0xff] %v346_v21  ;;  %v352_v24 = vld [vmem:[%s862_s0 + $0xc0] sm:$0xff] }
   0xd   :  { %349 = vst [vmem:[%s863_s2 + $0xb0] sm:$0xff] %v348_v22  ;;  %351 = vst [vmem:[%s863_s2 + $0xb8] sm:$0xff] %v350_v23  ;;  %v354_v25 = vld [vmem:[%s862_s0 + $0xc8] sm:$0xff]  ;;  %v356_v26 = vld [vmem:[%s862_s0 + $0xd0] sm:$0xff] }
   0xe   :  { %353 = vst [vmem:[%s863_s2 + $0xc0] sm:$0xff] %v352_v24  ;;  %355 = vst [vmem:[%s863_s2 + $0xc8] sm:$0xff] %v354_v25  ;;  %v358_v27 = vld [vmem:[%s862_s0 + $0xd8] sm:$0xff]  ;;  %v360_v28 = vld [vmem:[%s862_s0 + $0xe0] sm:$0xff] }
   0xf   :  { %357 = vst [vmem:[%s863_s2 + $0xd0] sm:$0xff] %v356_v26  ;;  %v362_v29 = vld [vmem:[%s862_s0 + $0xe8] sm:$0xff]  ;;  %359 = vst [vmem:[%s863_s2 + $0xd8] sm:$0xff] %v358_v27  ;;  %v364_v30 = vld [vmem:[%s862_s0 + $0xf0] sm:$0xff] }
  0x10   :  { %361 = vst [vmem:[%s863_s2 + $0xe0] sm:$0xff] %v360_v28  ;;  %363 = vst [vmem:[%s863_s2 + $0xe8] sm:$0xff] %v362_v29  ;;  %v366_v31 = vld [vmem:[%s862_s0 + $0xf8] sm:$0xff]  ;;  %v368_v32 = vld [vmem:[%s862_s0 + $0x100] sm:$0xff] }
  0x11   :  { %365 = vst [vmem:[%s863_s2 + $0xf0] sm:$0xff] %v364_v30  ;;  %367 = vst [vmem:[%s863_s2 + $0xf8] sm:$0xff] %v366_v31  ;;  %v370_v33 = vld [vmem:[%s862_s0 + $0x108] sm:$0xff]  ;;  %v139_v34 = vld [vmem:[%s864_s1] sm:$0xff] }
  0x12   :  { %369 = vst [vmem:[%s863_s2 + $0x100] sm:$0xff] %v368_v32  ;;  %v373_v35 = vld [vmem:[%s864_s1 + $0x8] sm:$0xff]  ;;  %371 = vst [vmem:[%s863_s2 + $0x108] sm:$0xff] %v370_v33  ;;  %v375_v36 = vld [vmem:[%s864_s1 + $0x10] sm:$0xff] }
  0x13   :  { %372 = vst [vmem:[%s863_s2 + $0x110] sm:$0xff] %v139_v34  ;;  %374 = vst [vmem:[%s863_s2 + $0x118] sm:$0xff] %v373_v35  ;;  %v377_v37 = vld [vmem:[%s864_s1 + $0x18] sm:$0xff]  ;;  %v379_v38 = vld [vmem:[%s864_s1 + $0x20] sm:$0xff] }
  0x14   :  { %376 = vst [vmem:[%s863_s2 + $0x120] sm:$0xff] %v375_v36  ;;  %378 = vst [vmem:[%s863_s2 + $0x128] sm:$0xff] %v377_v37  ;;  %v381_v39 = vld [vmem:[%s864_s1 + $0x28] sm:$0xff]  ;;  %v383_v40 = vld [vmem:[%s864_s1 + $0x30] sm:$0xff] }
  0x15   :  { %380 = vst [vmem:[%s863_s2 + $0x130] sm:$0xff] %v379_v38  ;;  %v385_v41 = vld [vmem:[%s864_s1 + $0x38] sm:$0xff]  ;;  %382 = vst [vmem:[%s863_s2 + $0x138] sm:$0xff] %v381_v39  ;;  %v387_v42 = vld [vmem:[%s864_s1 + $0x40] sm:$0xff] }
  0x16   :  { %384 = vst [vmem:[%s863_s2 + $0x140] sm:$0xff] %v383_v40  ;;  %386 = vst [vmem:[%s863_s2 + $0x148] sm:$0xff] %v385_v41  ;;  %v389_v43 = vld [vmem:[%s864_s1 + $0x48] sm:$0xff]  ;;  %v391_v44 = vld [vmem:[%s864_s1 + $0x50] sm:$0xff] }
  0x17   :  { %388 = vst [vmem:[%s863_s2 + $0x150] sm:$0xff] %v387_v42  ;;  %390 = vst [vmem:[%s863_s2 + $0x158] sm:$0xff] %v389_v43  ;;  %v393_v45 = vld [vmem:[%s864_s1 + $0x58] sm:$0xff]  ;;  %v395_v46 = vld [vmem:[%s864_s1 + $0x60] sm:$0xff] }
  0x18   :  { %392 = vst [vmem:[%s863_s2 + $0x160] sm:$0xff] %v391_v44  ;;  %v397_v47 = vld [vmem:[%s864_s1 + $0x68] sm:$0xff]  ;;  %394 = vst [vmem:[%s863_s2 + $0x168] sm:$0xff] %v393_v45  ;;  %v399_v48 = vld [vmem:[%s864_s1 + $0x70] sm:$0xff] }
  0x19   :  { %396 = vst [vmem:[%s863_s2 + $0x170] sm:$0xff] %v395_v46  ;;  %398 = vst [vmem:[%s863_s2 + $0x178] sm:$0xff] %v397_v47  ;;  %v401_v49 = vld [vmem:[%s864_s1 + $0x78] sm:$0xff]  ;;  %v403_v50 = vld [vmem:[%s864_s1 + $0x80] sm:$0xff] }
  0x1a   :  { %400 = vst [vmem:[%s863_s2 + $0x180] sm:$0xff] %v399_v48  ;;  %402 = vst [vmem:[%s863_s2 + $0x188] sm:$0xff] %v401_v49  ;;  %v405_v51 = vld [vmem:[%s864_s1 + $0x88] sm:$0xff]  ;;  %v407_v52 = vld [vmem:[%s864_s1 + $0x90] sm:$0xff] }
  0x1b   :  { %404 = vst [vmem:[%s863_s2 + $0x190] sm:$0xff] %v403_v50  ;;  %v409_v53 = vld [vmem:[%s864_s1 + $0x98] sm:$0xff]  ;;  %406 = vst [vmem:[%s863_s2 + $0x198] sm:$0xff] %v405_v51  ;;  %v411_v54 = vld [vmem:[%s864_s1 + $0xa0] sm:$0xff] }
  0x1c   :  { %408 = vst [vmem:[%s863_s2 + $0x1a0] sm:$0xff] %v407_v52  ;;  %410 = vst [vmem:[%s863_s2 + $0x1a8] sm:$0xff] %v409_v53  ;;  %v413_v55 = vld [vmem:[%s864_s1 + $0xa8] sm:$0xff]  ;;  %v415_v56 = vld [vmem:[%s864_s1 + $0xb0] sm:$0xff] }
  0x1d   :  { %412 = vst [vmem:[%s863_s2 + $0x1b0] sm:$0xff] %v411_v54  ;;  %414 = vst [vmem:[%s863_s2 + $0x1b8] sm:$0xff] %v413_v55  ;;  %v417_v57 = vld [vmem:[%s864_s1 + $0xb8] sm:$0xff]  ;;  %v419_v58 = vld [vmem:[%s864_s1 + $0xc0] sm:$0xff] }
  0x1e   :  { %416 = vst [vmem:[%s863_s2 + $0x1c0] sm:$0xff] %v415_v56  ;;  %v421_v59 = vld [vmem:[%s864_s1 + $0xc8] sm:$0xff]  ;;  %418 = vst [vmem:[%s863_s2 + $0x1c8] sm:$0xff] %v417_v57  ;;  %v423_v60 = vld [vmem:[%s864_s1 + $0xd0] sm:$0xff] }
  0x1f   :  { %420 = vst [vmem:[%s863_s2 + $0x1d0] sm:$0xff] %v419_v58  ;;  %422 = vst [vmem:[%s863_s2 + $0x1d8] sm:$0xff] %v421_v59  ;;  %v425_v61 = vld [vmem:[%s864_s1 + $0xd8] sm:$0xff]  ;;  %v427_v62 = vld [vmem:[%s864_s1 + $0xe0] sm:$0xff] }
  0x20   :  { %424 = vst [vmem:[%s863_s2 + $0x1e0] sm:$0xff] %v423_v60  ;;  %426 = vst [vmem:[%s863_s2 + $0x1e8] sm:$0xff] %v425_v61  ;;  %v429_v63 = vld [vmem:[%s864_s1 + $0xe8] sm:$0xff]  ;;  %v431_v0 = vld [vmem:[%s864_s1 + $0xf0] sm:$0xff] }
  0x21   :  { %428 = vst [vmem:[%s863_s2 + $0x1f0] sm:$0xff] %v427_v62  ;;  %v433_v1 = vld [vmem:[%s864_s1 + $0xf8] sm:$0xff]  ;;  %430 = vst [vmem:[%s863_s2 + $0x1f8] sm:$0xff] %v429_v63  ;;  %v435_v2 = vld [vmem:[%s864_s1 + $0x100] sm:$0xff] }
  0x22   :  { %432 = vst [vmem:[%s863_s2 + $0x200] sm:$0xff] %v431_v0  ;;  %434 = vst [vmem:[%s863_s2 + $0x208] sm:$0xff] %v433_v1  ;;  %v437_v3 = vld [vmem:[%s864_s1 + $0x108] sm:$0xff] }
  0x23   :  { %436 = vst [vmem:[%s863_s2 + $0x210] sm:$0xff] %v435_v2  ;;  %438 = vst [vmem:[%s863_s2 + $0x218] sm:$0xff] %v437_v3 }

// kernel: stft_pallas.1
= control target key start
LH: loop header
LB: loop body
LE: loop exit
PB: predicated region body
PF: predicated region fallthrough
CT: control target
= control target key end

     0   :  { %s1194_s12 = smov 0   ;;  %s1196_s13 = smov 0   ;;  %s1683_s0 = inlined_call_operand.vmem [shape: f32[272,256], index: 0, kind: input, shape index: {}]   ;;  %s1684_s1 = inlined_call_operand.vmem [shape: f32[2,64,256], index: 1, kind: input, shape index: {}, may-alias: {1,2}]   ;;  %s1685_s2 = inlined_call_operand.vmem [shape: f32[2,64,256], index: 2, kind: input, shape index: {}, may-alias: {1,2}]   ;;  %s1686_s3 = inlined_call_operand.vmem [shape: f32[2,272,128], index: 3, kind: output, shape index: {}]  }
   0x1   :  { %s1198_s14 = smov 0   ;;  %s1200_s15 = smov 0  }
   0x2   :  { %s1202_s16 = smov 0  }
   0x3 LB: > { %s25_s17 = sadd.s32 1, %s1164_s15  ;;  %p62_p1 = scmp.ne.s32.totalorder %s1156_s13, %s1152_s12  ;;  %s1168_s16 = sphi %s1202_s16, %s13_s16   ;;  %s1164_s15 = sphi %s1200_s15, %s1691_s15   ;;  %s1160_s14 = sphi %s1198_s14, %s1690_s14   ;;  %s1156_s13 = sphi %s1196_s13, %s1689_s13   ;;  %s1152_s12 = sphi %s1194_s12, %s1688_s12  }
   0x4   : > { %p27_p0 = scmp.ge.s32.totalorder %s25_s17, 2  ;;  %p63_p2 = scmp.eq.s32.totalorder %s1168_s16, 0 }
   0x5   : > { %s55_s20 = sadd.s32 1, %s1156_s13  ;;  %p998_p5 = scmp.ge.s32.totalorder %s1168_s16, 2 }
   0x6   : > { %s1693_s17 = smov (%p27_p0, %s25_s17), 0  ;;  %p1225_p3 = por %p63_p2, %p62_p1 }
   0x7   : > { %s50_s19 = ssub.s32 %s1164_s15, %s1693_s17  ;;  %149 = sbr.rel (%p998_p5) target bundleno = 28 (0x1c), region = 20 }
   0x8   : > { %p53_p4 = scmp.eq.s32.totalorder %s50_s19, 0 }
   0xa   : > { %s1233_s21 = scalar_select %p53_p4, %s1156_s13, %s55_s20  }
   0xc   : > { %152 = sbr.rel (!%p1225_p3) target bundleno = 20 (0x14), region = 24  ;;  %s154_s22 = sand.u32 (%p1225_p3), 1, %s1156_s13  }
   0xd   : > { %s1019_s23 = sshll.u32 (%p1225_p3), %s1164_s15, 7  ;;  %s999_s24 = sshll.u32 (%p1225_p3), %s154_s22, 6 }
   0xe   : > { %s160_s27 = scalar_lea.vmem (%p1225_p3), %s1684_s1, %s1019_s23  ;;  %s156_s28 = scalar_lea.vmem (%p1225_p3), [#allocation2], %s999_s24 }
   0xf   : > { %v203_v0 = vld [vmem:[%s160_s27] sm:$0xff] (%p1225_p3)  ;;  %v205_v1 = vld [vmem:[%s160_s27 + $0x10] sm:$0xff] (%p1225_p3) }
  0x10   : > { %v207_v2 = vld [vmem:[%s160_s27 + $0x20] sm:$0xff] (%p1225_p3)  ;;  %204 = vst [vmem:[%s156_s28] sm:$0xff] (%p1225_p3), %v203_v0  ;;  %206 = vst [vmem:[%s156_s28 + $0x8] sm:$0xff] (%p1225_p3), %v205_v1  ;;  %v209_v3 = vld [vmem:[%s160_s27 + $0x30] sm:$0xff] (%p1225_p3) }
  0x11   : > { %208 = vst [vmem:[%s156_s28 + $0x10] sm:$0xff] %v207_v2  ;;  %v211_v4 = vld [vmem:[%s160_s27 + $0x40] sm:$0xff]  ;;  %v213_v5 = vld [vmem:[%s160_s27 + $0x50] sm:$0xff]  ;;  %210 = vst [vmem:[%s156_s28 + $0x18] sm:$0xff] %v209_v3 }
  0x12   : > { %212 = vst [vmem:[%s156_s28 + $0x20] sm:$0xff] %v211_v4  ;;  %214 = vst [vmem:[%s156_s28 + $0x28] sm:$0xff] %v213_v5  ;;  %v215_v6 = vld [vmem:[%s160_s27 + $0x60] sm:$0xff]  ;;  %v217_v7 = vld [vmem:[%s160_s27 + $0x70] sm:$0xff] }
  0x13   : > { %216 = vst [vmem:[%s156_s28 + $0x30] sm:$0xff] %v215_v6  ;;  %218 = vst [vmem:[%s156_s28 + $0x38] sm:$0xff] %v217_v7 }
  0x14 PF: > { %224 = sbr.rel (!%p1225_p3) target bundleno = 28 (0x1c), region = 62  ;;  %s226_s29 = sand.u32 (%p1225_p3), 1, %s1156_s13  }
  0x15   : > { %s1020_s30 = sshll.u32 (%p1225_p3), %s1164_s15, 7  ;;  %s1002_s4 = sshll.u32 (%p1225_p3), %s226_s29, 6 }
  0x16   : > { %s927_s7 = scalar_lea.vmem (%p1225_p3), %s1685_s2, %s1020_s30  ;;  %s228_s8 = scalar_lea.vmem (%p1225_p3), [#allocation3], %s1002_s4 }
  0x17   : > { %v1005_v8 = vld [vmem:[%s927_s7 + $0x8] sm:$0xff] (%p1225_p3)  ;;  %v1006_v9 = vld [vmem:[%s927_s7 + $0x18] sm:$0xff] (%p1225_p3) }
  0x18   : > { %v1007_v10 = vld [vmem:[%s927_s7 + $0x28] sm:$0xff] (%p1225_p3)  ;;  %277 = vst [vmem:[%s228_s8] sm:$0xff] (%p1225_p3), %v1005_v8  ;;  %279 = vst [vmem:[%s228_s8 + $0x8] sm:$0xff] (%p1225_p3), %v1006_v9  ;;  %v1008_v11 = vld [vmem:[%s927_s7 + $0x38] sm:$0xff] (%p1225_p3) }
  0x19   : > { %281 = vst [vmem:[%s228_s8 + $0x10] sm:$0xff] %v1007_v10  ;;  %v1009_v12 = vld [vmem:[%s927_s7 + $0x48] sm:$0xff]  ;;  %v1010_v13 = vld [vmem:[%s927_s7 + $0x58] sm:$0xff]  ;;  %283 = vst [vmem:[%s228_s8 + $0x18] sm:$0xff] %v1008_v11 }
  0x1a   : > { %285 = vst [vmem:[%s228_s8 + $0x20] sm:$0xff] %v1009_v12  ;;  %287 = vst [vmem:[%s228_s8 + $0x28] sm:$0xff] %v1010_v13  ;;  %v1011_v14 = vld [vmem:[%s927_s7 + $0x68] sm:$0xff]  ;;  %v1012_v15 = vld [vmem:[%s927_s7 + $0x78] sm:$0xff] }
  0x1b   : > { %289 = vst [vmem:[%s228_s8 + $0x30] sm:$0xff] %v1011_v14  ;;  %291 = vst [vmem:[%s228_s8 + $0x38] sm:$0xff] %v1012_v15 }
  0x1c PF: > { %p1013_p6 = scmp.ge.s32.totalorder %s1168_s16, 1  ;;  %p296_p7 = scmp.lt.s32.totalorder %s1168_s16, 3 }
  0x1e   : > { %p297_p8 = pnand %p1013_p6, %p296_p7 }
  0x1f   : > { %s303_s9 = sand.u32 (!%p297_p8), 1, %s1152_s12   ;;  %s1171_s18 = smov (!%p297_p8), 127  }
  0x20   : > { %300 = sbr.rel (%p297_p8) target bundleno = 507 (0x1fb), region = 100  ;;  %s1014_s10 = sshll.u32 (!%p297_p8), %s303_s9, 6 }
  0x21   : > { %s1255_s11 = scalar_lea.vmem (!%p297_p8), [#allocation2], %s1014_s10  ;;  %s312_s12 = scalar_lea.vmem (!%p297_p8), [#allocation3], %s1014_s10 }
  0x22   : > { %s1172_s19 = smov (!%p297_p8), 125   ;;  %s1173_s20 = smov (!%p297_p8), 126  }
  0x23   : > { %p341_p9 = scmp.lt.s32.totalorder (!%p297_p8), %s1160_s14, 1 }
  0x25   : > { %v1170_v16 = vmov 0.0   ;;  %v1258_v17 = vld [vmem:[%s1255_s11 + $0x38] sm:$0xff]  ;;  %v1261_v18 = vld [vmem:[%s1255_s11 + $0x30] sm:$0xff]  ;;  %v362_v21 = vld [vmem:[%s312_s12 + $0x28] sm:$0xff]  ;;  %vm429_vm0 = vcmask 1039360   ;;  %vm543_vm1 = vcmask 1022976  }
  0x26   : > { %620 = vmatprep.subr.mxu0 %v1170_v16  ;;  %1021 = vmatprep.subr.mxu1 %v1170_v16  ;;  %v364_v19 = vld [vmem:[%s312_s12 + $0x38] sm:$0xff]  ;;  %v363_v20 = vld [vmem:[%s312_s12 + $0x30] sm:$0xff]  ;;  %v1270_v22 = vld [vmem:[%s1255_s11 + $0x28] sm:$0xff]  ;;  %vm486_vm2 = vcmask 1031168   ;;  %s1695_s14 = smov (!%p341_p9, %s1160_s14), 1 }
  0x27   : > { %387 = vrot.lane.b32.xlu0 %v1258_v17, %s1171_s18  ;;  %385 = vrot.lane.b32.xlu1 %v1261_v18, %s1171_s18  ;;  %v361_v23 = vld [vmem:[%s312_s12 + $0x20] sm:$0xff]  ;;  %v360_v25 = vld [vmem:[%s312_s12 + $0x18] sm:$0xff]  ;;  %s1085_s5 = smul.u32 272, %s1695_s14 }
  0x28   : > { %v1276_v24 = vld [vmem:[%s1255_s11 + $0x20] sm:$0xff]  ;;  %v1282_v26 = vld [vmem:[%s1255_s11 + $0x18] sm:$0xff]  ;;  %v359_v27 = vld [vmem:[%s312_s12 + $0x10] sm:$0xff] }
  0x29   : > { %v1288_v28 = vld [vmem:[%s1255_s11 + $0x10] sm:$0xff]  ;;  %v358_v29 = vld [vmem:[%s312_s12 + $0x8] sm:$0xff]  ;;  %v357_v31 = vld [vmem:[%s312_s12] sm:$0xff]  ;;  %s1632_s8 = scalar_lea.vmem %s1686_s3, %s1085_s5 }
  0x2a   : > { %v1294_v30 = vld [vmem:[%s1255_s11 + $0x8] sm:$0xff]  ;;  %v1300_v32 = vld [vmem:[%s1255_s11] sm:$0xff]  ;;  %v587_v34 = vld [vmem:[%s1683_s0 + $0x118] sm:$0xff] }
  0x2b   : > { %419 = vrot.lane.b32.xlu0 %v364_v19, %s1171_s18  ;;  %417 = vrot.lane.b32.xlu1 %v363_v20, %s1171_s18  ;;  %v553_v33 = vld [vmem:[%s1683_s0 + $0x8] sm:$0xff] }
  0x2c   : > { %684 = vmatprep.mubr.f32.mxu0 %v553_v33  ;;  %769 = vmatprep.mubr.f32.mxu1 %v587_v34 }
  0x2f   : > { %415 = vrot.lane.b32.xlu1 %v362_v21, %s1171_s18  ;;  %383 = vrot.lane.b32.xlu0 %v1270_v22, %s1171_s18 }
  0x33   : > { %413 = vrot.lane.b32.xlu1 %v361_v23, %s1171_s18  ;;  %381 = vrot.lane.b32.xlu0 %v1276_v24, %s1171_s18 }
  0x37   : > { %411 = vrot.lane.b32.xlu1 %v360_v25, %s1171_s18  ;;  %379 = vrot.lane.b32.xlu0 %v1282_v26, %s1171_s18 }
  0x3b   : > { %409 = vrot.lane.b32.xlu1 %v359_v27, %s1171_s18  ;;  %377 = vrot.lane.b32.xlu0 %v1288_v28, %s1171_s18 }
  0x3f   : > { %407 = vrot.lane.b32.xlu1 %v358_v29, %s1171_s18  ;;  %375 = vrot.lane.b32.xlu0 %v1294_v30, %s1171_s18 }
  0x43   : > { %405 = vrot.lane.b32.xlu1 %v357_v31, %s1171_s18  ;;  %373 = vrot.lane.b32.xlu0 %v1300_v32, %s1171_s18 }
  0x47   : > { %533 = vrot.lane.b32.xlu1 %v364_v19, %s1172_s19  ;;  %509 = vrot.lane.b32.xlu0 %v1258_v17, %s1172_s19 }
  0x4b   : > { %531 = vrot.lane.b32.xlu1 %v363_v20, %s1172_s19  ;;  %507 = vrot.lane.b32.xlu0 %v1261_v18, %s1172_s19 }
  0x4f   : > { %529 = vrot.lane.b32.xlu1 %v362_v21, %s1172_s19  ;;  %505 = vrot.lane.b32.xlu0 %v1270_v22, %s1172_s19 }
  0x53   : > { %527 = vrot.lane.b32.xlu1 %v361_v23, %s1172_s19  ;;  %503 = vrot.lane.b32.xlu0 %v1276_v24, %s1172_s19 }
  0x57   : > { %525 = vrot.lane.b32.xlu1 %v360_v25, %s1172_s19  ;;  %501 = vrot.lane.b32.xlu0 %v1282_v26, %s1172_s19 }
  0x5b   : > { %523 = vrot.lane.b32.xlu1 %v359_v27, %s1172_s19  ;;  %499 = vrot.lane.b32.xlu0 %v1288_v28, %s1172_s19 }
  0x5f   : > { %521 = vrot.lane.b32.xlu1 %v358_v29, %s1172_s19  ;;  %497 = vrot.lane.b32.xlu0 %v1294_v30, %s1172_s19 }
  0x63   : > { %519 = vrot.lane.b32.xlu1 %v357_v31, %s1172_s19  ;;  %495 = vrot.lane.b32.xlu0 %v1300_v32, %s1172_s19 }
  0x67   : > { %476 = vrot.lane.b32.xlu1 %v364_v19, %s1173_s20  ;;  %452 = vrot.lane.b32.xlu0 %v1258_v17, %s1173_s20 }
  0x6b   : > { %474 = vrot.lane.b32.xlu1 %v363_v20, %s1173_s20  ;;  %450 = vrot.lane.b32.xlu0 %v1261_v18, %s1173_s20 }
  0x6f   : > { %472 = vrot.lane.b32.xlu1 %v362_v21, %s1173_s20  ;;  %448 = vrot.lane.b32.xlu0 %v1270_v22, %s1173_s20 }
  0x73   : > { %470 = vrot.lane.b32.xlu1 %v361_v23, %s1173_s20  ;;  %446 = vrot.lane.b32.xlu0 %v1276_v24, %s1173_s20 }
  0x77   : > { %468 = vrot.lane.b32.xlu1 %v360_v25, %s1173_s20  ;;  %444 = vrot.lane.b32.xlu0 %v1282_v26, %s1173_s20 }
  0x7b   : > { %466 = vrot.lane.b32.xlu1 %v359_v27, %s1173_s20  ;;  %442 = vrot.lane.b32.xlu0 %v1288_v28, %s1173_s20 }
  0x7f   : > { %464 = vrot.lane.b32.xlu1 %v358_v29, %s1173_s20  ;;  %440 = vrot.lane.b32.xlu0 %v1294_v30, %s1173_s20 }
  0x83   : > { %462 = vrot.lane.b32.xlu1 %v357_v31, %s1173_s20  ;;  %438 = vrot.lane.b32.xlu0 %v1300_v32, %s1173_s20 }
  0x99   : > { %v388_v35 = vpop.permute.xlu0 %387  ;;  %v386_v36 = vpop.permute.xlu1 %385 }
  0x9d   : > { %v420_v37 = vpop.permute.xlu0 %419  ;;  %v418_v38 = vpop.permute.xlu1 %417 }
  0x9e   : > { %v437_v39 = vsel %vm429_vm0, %v388_v35, %v420_v37  ;;  %v436_v40 = vsel %vm429_vm0, %v386_v36, %v418_v38 }
  0x9f   : > { %621 = vmatpush1.msra.mxu0 %v437_v39  ;;  %1053 = vmatpush1.msra.mxu1 %v437_v39 }
  0xa0   : > { %622 = vmatprep.subr.mxu0 %v1170_v16  ;;  %1022 = vmatprep.subr.mxu1 %v1170_v16 }
  0xa1   : > { %623 = vmatpush1.msra.mxu0 %v436_v40  ;;  %1054 = vmatpush1.msra.mxu1 %v436_v40  ;;  %v416_v41 = vpop.permute.xlu1 %415  ;;  %v384_v42 = vpop.permute.xlu0 %383 }
  0xa2   : > { %624 = vmatprep.subr.mxu0 %v1170_v16  ;;  %1023 = vmatprep.subr.mxu1 %v1170_v16  ;;  %v435_v43 = vsel %vm429_vm0, %v384_v42, %v416_v41 }
  0xa3   : > { %625 = vmatpush1.msra.mxu0 %v435_v43  ;;  %1055 = vmatpush1.msra.mxu1 %v435_v43  ;;  %v552_v43 = vld [vmem:[%s1683_s0] sm:$0xff] }
  0xa4   : > { %626 = vmatprep.subr.mxu0 %v1170_v16  ;;  %1024 = vmatprep.subr.mxu1 %v1170_v16 }
  0xa5   : > { %v414_v44 = vpop.permute.xlu1 %413  ;;  %v382_v45 = vpop.permute.xlu0 %381 }
  0xa6   : > { %v434_v46 = vsel %vm429_vm0, %v382_v45, %v414_v44  ;;  %v586_v44 = vld [vmem:[%s1683_s0 + $0x110] sm:$0xff] }
  0xa7   : > { %627 = vmatpush1.msra.mxu0 %v434_v46  ;;  %1056 = vmatpush1.msra.mxu1 %v434_v46  ;;  %v555_v46 = vld [vmem:[%s1683_s0 + $0x18] sm:$0xff] }
  0xa8   : > { %628 = vmatprep.subr.mxu0 %v1170_v16  ;;  %1025 = vmatprep.subr.mxu1 %v1170_v16 }
  0xa9   : > { %v412_v47 = vpop.permute.xlu1 %411  ;;  %v380_v48 = vpop.permute.xlu0 %379 }
  0xaa   : > { %v433_v49 = vsel %vm429_vm0, %v380_v48, %v412_v47  ;;  %v554_v47 = vld [vmem:[%s1683_s0 + $0x10] sm:$0xff]  ;;  %v588_v48 = vld [vmem:[%s1683_s0 + $0x120] sm:$0xff] }
  0xab   : > { %629 = vmatpush1.msra.mxu0 %v433_v49  ;;  %1057 = vmatpush1.msra.mxu1 %v433_v49  ;;  %v557_v49 = vld [vmem:[%s1683_s0 + $0x28] sm:$0xff] }
  0xac   : > { %630 = vmatprep.subr.mxu0 %v1170_v16  ;;  %1026 = vmatprep.subr.mxu1 %v1170_v16 }
  0xad   : > { %v410_v50 = vpop.permute.xlu1 %409  ;;  %v378_v51 = vpop.permute.xlu0 %377 }
  0xae   : > { %v432_v52 = vsel %vm429_vm0, %v378_v51, %v410_v50  ;;  %v591_v50 = vld [vmem:[%s1683_s0 + $0x138] sm:$0xff]  ;;  %v556_v51 = vld [vmem:[%s1683_s0 + $0x20] sm:$0xff] }
  0xaf   : > { %631 = vmatpush1.msra.mxu0 %v432_v52  ;;  %1058 = vmatpush1.msra.mxu1 %v432_v52  ;;  %v590_v52 = vld [vmem:[%s1683_s0 + $0x130] sm:$0xff] }
  0xb0   : > { %632 = vmatprep.subr.mxu0 %v1170_v16  ;;  %1027 = vmatprep.subr.mxu1 %v1170_v16 }
  0xb1   : > { %v408_v53 = vpop.permute.xlu1 %407  ;;  %v376_v54 = vpop.permute.xlu0 %375 }
  0xb2   : > { %v431_v55 = vsel %vm429_vm0, %v376_v54, %v408_v53  ;;  %v559_v53 = vld [vmem:[%s1683_s0 + $0x38] sm:$0xff]  ;;  %v593_v54 = vld [vmem:[%s1683_s0 + $0x148] sm:$0xff] }
  0xb3   : > { %633 = vmatpush1.msra.mxu0 %v431_v55  ;;  %1059 = vmatpush1.msra.mxu1 %v431_v55  ;;  %v558_v55 = vld [vmem:[%s1683_s0 + $0x30] sm:$0xff] }
  0xb4   : > { %634 = vmatprep.subr.mxu0 %v1170_v16  ;;  %1028 = vmatprep.subr.mxu1 %v1170_v16 }
  0xb5   : > { %v406_v56 = vpop.permute.xlu1 %405  ;;  %v374_v57 = vpop.permute.xlu0 %373 }
  0xb6   : > { %v430_v58 = vsel %vm429_vm0, %v374_v57, %v406_v56  ;;  %v592_v56 = vld [vmem:[%s1683_s0 + $0x140] sm:$0xff]  ;;  %v561_v57 = vld [vmem:[%s1683_s0 + $0x48] sm:$0xff] }
  0xb7   : > { %635 = vmatpush1.msra.mxu0 %v430_v58  ;;  %1060 = vmatpush1.msra.mxu1 %v430_v58  ;;  %v595_v58 = vld [vmem:[%s1683_s0 + $0x158] sm:$0xff] }
  0xb8   : > { %636 = vmatprep.subr.mxu0 %v1170_v16  ;;  %1029 = vmatprep.subr.mxu1 %v1170_v16 }
  0xb9   : > { %v534_v59 = vpop.permute.xlu1 %533  ;;  %637 = vmatpush1.msra.mxu0 %v1258_v17  ;;  %1061 = vmatpush1.msra.mxu1 %v1258_v17  ;;  %v510_v60 = vpop.permute.xlu0 %509 }
  0xba   : > { %638 = vmatprep.subr.mxu0 %v1170_v16  ;;  %1030 = vmatprep.subr.mxu1 %v1170_v16  ;;  %v551_v3 = vsel %vm543_vm1, %v510_v60, %v534_v59  ;;  %v560_v59 = vld [vmem:[%s1683_s0 + $0x40] sm:$0xff]  ;;  %v594_v60 = vld [vmem:[%s1683_s0 + $0x150] sm:$0xff] }
  0xbb   : > { %639 = vmatpush1.msra.mxu0 %v1261_v18  ;;  %1062 = vmatpush1.msra.mxu1 %v1261_v18 }
  0xbc   : > { %640 = vmatprep.subr.mxu0 %v1170_v16  ;;  %1031 = vmatprep.subr.mxu1 %v1170_v16 }
  0xbd   : > { %v532_v61 = vpop.permute.xlu1 %531  ;;  %641 = vmatpush1.msra.mxu0 %v1270_v22  ;;  %1063 = vmatpush1.msra.mxu1 %v1270_v22  ;;  %v508_v62 = vpop.permute.xlu0 %507 }
  0xbe   : > { %642 = vmatprep.subr.mxu0 %v1170_v16  ;;  %1032 = vmatprep.subr.mxu1 %v1170_v16  ;;  %v550_v6 = vsel %vm543_vm1, %v508_v62, %v532_v61  ;;  %v563_v61 = vld [vmem:[%s1683_s0 + $0x58] sm:$0xff]  ;;  %v597_v62 = vld [vmem:[%s1683_s0 + $0x168] sm:$0xff] }
  0xbf   : > { %643 = vmatpush1.msra.mxu0 %v1276_v24  ;;  %1064 = vmatpush1.msra.mxu1 %v1276_v24 }
  0xc0   : > { %644 = vmatprep.subr.mxu0 %v1170_v16  ;;  %1033 = vmatprep.subr.mxu1 %v1170_v16 }
  0xc1   : > { %v530_v63 = vpop.permute.xlu1 %529  ;;  %645 = vmatpush1.msra.mxu0 %v1282_v26  ;;  %1065 = vmatpush1.msra.mxu1 %v1282_v26  ;;  %v506_v0 = vpop.permute.xlu0 %505 }
  0xc2   : > { %646 = vmatprep.subr.mxu0 %v1170_v16  ;;  %1034 = vmatprep.subr.mxu1 %v1170_v16  ;;  %v549_v7 = vsel %vm543_vm1, %v506_v0, %v530_v63  ;;  %v562_v63 = vld [vmem:[%s1683_s0 + $0x50] sm:$0xff]  ;;  %v596_v0 = vld [vmem:[%s1683_s0 + $0x160] sm:$0xff] }
  0xc3   : > { %647 = vmatpush1.msra.mxu0 %v1288_v28  ;;  %1066 = vmatpush1.msra.mxu1 %v1288_v28 }
  0xc4   : > { %648 = vmatprep.subr.mxu0 %v1170_v16  ;;  %1035 = vmatprep.subr.mxu1 %v1170_v16 }
  0xc5   : > { %v528_v1 = vpop.permute.xlu1 %527  ;;  %649 = vmatpush1.msra.mxu0 %v1294_v30  ;;  %1067 = vmatpush1.msra.mxu1 %v1294_v30  ;;  %v504_v2 = vpop.permute.xlu0 %503 }
  0xc6   : > { %650 = vmatprep.subr.mxu0 %v1170_v16  ;;  %1036 = vmatprep.subr.mxu1 %v1170_v16  ;;  %v548_v10 = vsel %vm543_vm1, %v504_v2, %v528_v1  ;;  %v565_v1 = vld [vmem:[%s1683_s0 + $0x68] sm:$0xff]  ;;  %v599_v2 = vld [vmem:[%s1683_s0 + $0x178] sm:$0xff] }
  0xc7   : > { %651 = vmatpush1.msra.mxu0 %v1300_v32  ;;  %1068 = vmatpush1.msra.mxu1 %v1300_v32 }
  0xc8   : > { %652 = vmatprep.subr.mxu0 %v1170_v16  ;;  %1037 = vmatprep.subr.mxu1 %v1170_v16 }
  0xc9   : > { %v526_v4 = vpop.permute.xlu1 %525  ;;  %653 = vmatpush2.msra.mxu0 %v551_v3  ;;  %1069 = vmatpush2.msra.mxu1 %v551_v3  ;;  %v502_v5 = vpop.permute.xlu0 %501  ;;  %v564_v3 = vld [vmem:[%s1683_s0 + $0x60] sm:$0xff] }
  0xca   : > { %654 = vmatprep.subr.mxu0 %v1170_v16  ;;  %1038 = vmatprep.subr.mxu1 %v1170_v16  ;;  %v547_v11 = vsel %vm543_vm1, %v502_v5, %v526_v4  ;;  %v598_v4 = vld [vmem:[%s1683_s0 + $0x170] sm:$0xff]  ;;  %v567_v5 = vld [vmem:[%s1683_s0 + $0x78] sm:$0xff] }
  0xcb   : > { %655 = vmatpush2.msra.mxu0 %v550_v6  ;;  %1070 = vmatpush2.msra.mxu1 %v550_v6  ;;  %v601_v6 = vld [vmem:[%s1683_s0 + $0x188] sm:$0xff] }
  0xcc   : > { %656 = vmatprep.subr.mxu0 %v1170_v16  ;;  %1039 = vmatprep.subr.mxu1 %v1170_v16 }
  0xcd   : > { %v524_v8 = vpop.permute.xlu1 %523  ;;  %657 = vmatpush2.msra.mxu0 %v549_v7  ;;  %1071 = vmatpush2.msra.mxu1 %v549_v7  ;;  %v500_v9 = vpop.permute.xlu0 %499  ;;  %v566_v7 = vld [vmem:[%s1683_s0 + $0x70] sm:$0xff] }
  0xce   : > { %658 = vmatprep.subr.mxu0 %v1170_v16  ;;  %1040 = vmatprep.subr.mxu1 %v1170_v16  ;;  %v546_v14 = vsel %vm543_vm1, %v500_v9, %v524_v8  ;;  %v600_v8 = vld [vmem:[%s1683_s0 + $0x180] sm:$0xff]  ;;  %v569_v9 = vld [vmem:[%s1683_s0 + $0x88] sm:$0xff] }
  0xcf   : > { %659 = vmatpush2.msra.mxu0 %v548_v10  ;;  %1072 = vmatpush2.msra.mxu1 %v548_v10  ;;  %v603_v10 = vld [vmem:[%s1683_s0 + $0x198] sm:$0xff] }
  0xd0   : > { %660 = vmatprep.subr.mxu0 %v1170_v16  ;;  %1041 = vmatprep.subr.mxu1 %v1170_v16 }
  0xd1   : > { %v522_v12 = vpop.permute.xlu1 %521  ;;  %661 = vmatpush2.msra.mxu0 %v547_v11  ;;  %1073 = vmatpush2.msra.mxu1 %v547_v11  ;;  %v498_v13 = vpop.permute.xlu0 %497  ;;  %v568_v11 = vld [vmem:[%s1683_s0 + $0x80] sm:$0xff] }
  0xd2   : > { %662 = vmatprep.subr.mxu0 %v1170_v16  ;;  %1042 = vmatprep.subr.mxu1 %v1170_v16  ;;  %v545_v15 = vsel %vm543_vm1, %v498_v13, %v522_v12  ;;  %v602_v12 = vld [vmem:[%s1683_s0 + $0x190] sm:$0xff]  ;;  %v571_v13 = vld [vmem:[%s1683_s0 + $0x98] sm:$0xff] }
  0xd3   : > { %663 = vmatpush2.msra.mxu0 %v546_v14  ;;  %1074 = vmatpush2.msra.mxu1 %v546_v14  ;;  %v605_v14 = vld [vmem:[%s1683_s0 + $0x1a8] sm:$0xff] }
  0xd4   : > { %664 = vmatprep.subr.mxu0 %v1170_v16  ;;  %1043 = vmatprep.subr.mxu1 %v1170_v16 }
  0xd5   : > { %v520_v17 = vpop.permute.xlu1 %519  ;;  %665 = vmatpush2.msra.mxu0 %v545_v15  ;;  %1075 = vmatpush2.msra.mxu1 %v545_v15  ;;  %v496_v18 = vpop.permute.xlu0 %495  ;;  %v570_v15 = vld [vmem:[%s1683_s0 + $0x90] sm:$0xff] }
  0xd6   : > { %666 = vmatprep.subr.mxu0 %v1170_v16  ;;  %1044 = vmatprep.subr.mxu1 %v1170_v16  ;;  %v544_v19 = vsel %vm543_vm1, %v496_v18, %v520_v17  ;;  %v604_v17 = vld [vmem:[%s1683_s0 + $0x1a0] sm:$0xff]  ;;  %v573_v18 = vld [vmem:[%s1683_s0 + $0xa8] sm:$0xff] }
  0xd7   : > { %667 = vmatpush2.msra.mxu0 %v544_v19  ;;  %1076 = vmatpush2.msra.mxu1 %v544_v19  ;;  %v607_v19 = vld [vmem:[%s1683_s0 + $0x1b8] sm:$0xff] }
  0xd8   : > { %668 = vmatprep.subr.mxu0 %v1170_v16  ;;  %1045 = vmatprep.subr.mxu1 %v1170_v16 }
  0xd9   : > { %v477_v20 = vpop.permute.xlu1 %476  ;;  %v453_v21 = vpop.permute.xlu0 %452 }
  0xda   : > { %v494_v22 = vsel %vm486_vm2, %v453_v21, %v477_v20  ;;  %v572_v20 = vld [vmem:[%s1683_s0 + $0xa0] sm:$0xff]  ;;  %v606_v21 = vld [vmem:[%s1683_s0 + $0x1b0] sm:$0xff] }
  0xdb   : > { %669 = vmatpush2.msra.mxu0 %v494_v22  ;;  %1077 = vmatpush2.msra.mxu1 %v494_v22  ;;  %v575_v22 = vld [vmem:[%s1683_s0 + $0xb8] sm:$0xff] }
  0xdc   : > { %670 = vmatprep.subr.mxu0 %v1170_v16  ;;  %1046 = vmatprep.subr.mxu1 %v1170_v16 }
  0xdd   : > { %v475_v23 = vpop.permute.xlu1 %474  ;;  %v451_v24 = vpop.permute.xlu0 %450 }
  0xde   : > { %v493_v25 = vsel %vm486_vm2, %v451_v24, %v475_v23  ;;  %v609_v23 = vld [vmem:[%s1683_s0 + $0x1c8] sm:$0xff]  ;;  %v574_v24 = vld [vmem:[%s1683_s0 + $0xb0] sm:$0xff] }
  0xdf   : > { %671 = vmatpush2.msra.mxu0 %v493_v25  ;;  %1078 = vmatpush2.msra.mxu1 %v493_v25  ;;  %v608_v25 = vld [vmem:[%s1683_s0 + $0x1c0] sm:$0xff] }
  0xe0   : > { %672 = vmatprep.subr.mxu0 %v1170_v16  ;;  %1047 = vmatprep.subr.mxu1 %v1170_v16 }
  0xe1   : > { %v473_v26 = vpop.permute.xlu1 %472  ;;  %v449_v27 = vpop.permute.xlu0 %448 }
  0xe2   : > { %v492_v28 = vsel %vm486_vm2, %v449_v27, %v473_v26  ;;  %v577_v26 = vld [vmem:[%s1683_s0 + $0xc8] sm:$0xff]  ;;  %v611_v27 = vld [vmem:[%s1683_s0 + $0x1d8] sm:$0xff] }
  0xe3   : > { %673 = vmatpush2.msra.mxu0 %v492_v28  ;;  %1079 = vmatpush2.msra.mxu1 %v492_v28  ;;  %v576_v28 = vld [vmem:[%s1683_s0 + $0xc0] sm:$0xff] }
  0xe4   : > { %674 = vmatprep.subr.mxu0 %v1170_v16  ;;  %1048 = vmatprep.subr.mxu1 %v1170_v16 }
  0xe5   : > { %v471_v29 = vpop.permute.xlu1 %470  ;;  %v447_v30 = vpop.permute.xlu0 %446 }
  0xe6   : > { %v491_v31 = vsel %vm486_vm2, %v447_v30, %v471_v29  ;;  %v610_v29 = vld [vmem:[%s1683_s0 + $0x1d0] sm:$0xff]  ;;  %v579_v30 = vld [vmem:[%s1683_s0 + $0xd8] sm:$0xff] }
  0xe7   : > { %675 = vmatpush2.msra.mxu0 %v491_v31  ;;  %1080 = vmatpush2.msra.mxu1 %v491_v31  ;;  %v613_v31 = vld [vmem:[%s1683_s0 + $0x1e8] sm:$0xff] }
  0xe8   : > { %676 = vmatprep.subr.mxu0 %v1170_v16  ;;  %1049 = vmatprep.subr.mxu1 %v1170_v16 }
  0xe9   : > { %v469_v32 = vpop.permute.xlu1 %468  ;;  %v445_v33 = vpop.permute.xlu0 %444 }
  0xea   : > { %v490_v34 = vsel %vm486_vm2, %v445_v33, %v469_v32  ;;  %v578_v32 = vld [vmem:[%s1683_s0 + $0xd0] sm:$0xff]  ;;  %v612_v33 = vld [vmem:[%s1683_s0 + $0x1e0] sm:$0xff] }
  0xeb   : > { %677 = vmatpush2.msra.mxu0 %v490_v34  ;;  %1081 = vmatpush2.msra.mxu1 %v490_v34  ;;  %v581_v34 = vld [vmem:[%s1683_s0 + $0xe8] sm:$0xff] }
  0xec   : > { %678 = vmatprep.subr.mxu0 %v1170_v16  ;;  %1050 = vmatprep.subr.mxu1 %v1170_v16 }
  0xed   : > { %v467_v35 = vpop.permute.xlu1 %466  ;;  %v443_v36 = vpop.permute.xlu0 %442 }
  0xee   : > { %v489_v37 = vsel %vm486_vm2, %v443_v36, %v467_v35  ;;  %v615_v35 = vld [vmem:[%s1683_s0 + $0x1f8] sm:$0xff]  ;;  %v580_v36 = vld [vmem:[%s1683_s0 + $0xe0] sm:$0xff] }
  0xef   : > { %679 = vmatpush2.msra.mxu0 %v489_v37  ;;  %1082 = vmatpush2.msra.mxu1 %v489_v37  ;;  %v614_v37 = vld [vmem:[%s1683_s0 + $0x1f0] sm:$0xff] }
  0xf0   : > { %680 = vmatprep.subr.mxu0 %v1170_v16  ;;  %1051 = vmatprep.subr.mxu1 %v1170_v16 }
  0xf1   : > { %v465_v38 = vpop.permute.xlu1 %464  ;;  %v441_v39 = vpop.permute.xlu0 %440 }
  0xf2   : > { %v488_v40 = vsel %vm486_vm2, %v441_v39, %v465_v38  ;;  %v583_v38 = vld [vmem:[%s1683_s0 + $0xf8] sm:$0xff]  ;;  %v617_v39 = vld [vmem:[%s1683_s0 + $0x208] sm:$0xff] }
  0xf3   : > { %681 = vmatpush2.msra.mxu0 %v488_v40  ;;  %1083 = vmatpush2.msra.mxu1 %v488_v40  ;;  %v582_v40 = vld [vmem:[%s1683_s0 + $0xf0] sm:$0xff] }
  0xf4   : > { %682 = vmatprep.subr.mxu0 %v1170_v16  ;;  %1052 = vmatprep.subr.mxu1 %v1170_v16  ;;  %v589_v16 = vld [vmem:[%s1683_s0 + $0x128] sm:$0xff] }
  0xf5   : > { %v463_v41 = vpop.permute.xlu1 %462  ;;  %v439_v42 = vpop.permute.xlu0 %438 }
  0xf6   : > { %v487_v45 = vsel %vm486_vm2, %v439_v42, %v463_v41  ;;  %v616_v41 = vld [vmem:[%s1683_s0 + $0x200] sm:$0xff]  ;;  %v585_v42 = vld [vmem:[%s1683_s0 + $0x108] sm:$0xff] }
  0xf7   : > { %683 = vmatpush2.msra.mxu0 %v487_v45  ;;  %1084 = vmatpush2.msra.mxu1 %v487_v45  ;;  %v618_v45 = vld [vmem:[%s1683_s0 + $0x210] sm:$0xff] }
  0xf8   : > { %685 = vmatmul.mubr.f32.vlgmr.msra.gmra.mxu0 %v552_v43  ;;  %770 = vmatmul.mubr.f32.vlgmr.msra.gmra.mxu1 %v586_v44  ;;  %v619_v43 = vld [vmem:[%s1683_s0 + $0x218] sm:$0xff]  ;;  %v584_v44 = vld [vmem:[%s1683_s0 + $0x100] sm:$0xff] }
  0xf9   : > { %689 = vmatprep.mubr.f32.mxu0 %v555_v46  ;;  %774 = vmatprep.mubr.f32.mxu1 %v589_v16 }
  0xfc   : > { %690 = vmatmul.mubr.f32.gmra.mxu0 %v554_v47  ;;  %775 = vmatmul.mubr.f32.gmra.mxu1 %v588_v48 }
  0xfd   : > { %694 = vmatprep.mubr.f32.mxu0 %v557_v49  ;;  %779 = vmatprep.mubr.f32.mxu1 %v591_v50 }
 0x100   : > { %695 = vmatmul.mubr.f32.gmra.mxu0 %v556_v51  ;;  %780 = vmatmul.mubr.f32.gmra.mxu1 %v590_v52 }
 0x101   : > { %699 = vmatprep.mubr.f32.mxu0 %v559_v53  ;;  %784 = vmatprep.mubr.f32.mxu1 %v593_v54 }
 0x104   : > { %700 = vmatmul.mubr.f32.gmra.mxu0 %v558_v55  ;;  %785 = vmatmul.mubr.f32.gmra.mxu1 %v592_v56 }
 0x105   : > { %704 = vmatprep.mubr.f32.mxu0 %v561_v57  ;;  %789 = vmatprep.mubr.f32.mxu1 %v595_v58 }
 0x108   : > { %705 = vmatmul.mubr.f32.gmra.mxu0 %v560_v59  ;;  %790 = vmatmul.mubr.f32.gmra.mxu1 %v594_v60 }
 0x109   : > { %709 = vmatprep.mubr.f32.mxu0 %v563_v61  ;;  %794 = vmatprep.mubr.f32.mxu1 %v597_v62 }
 0x10c   : > { %710 = vmatmul.mubr.f32.gmra.mxu0 %v562_v63  ;;  %795 = vmatmul.mubr.f32.gmra.mxu1 %v596_v0 }
 0x10d   : > { %714 = vmatprep.mubr.f32.mxu0 %v565_v1  ;;  %799 = vmatprep.mubr.f32.mxu1 %v599_v2 }
 0x110   : > { %715 = vmatmul.mubr.f32.gmra.mxu0 %v564_v3  ;;  %800 = vmatmul.mubr.f32.gmra.mxu1 %v598_v4 }
 0x111   : > { %719 = vmatprep.mubr.f32.mxu0 %v567_v5  ;;  %804 = vmatprep.mubr.f32.mxu1 %v601_v6 }
 0x114   : > { %720 = vmatmul.mubr.f32.gmra.mxu0 %v566_v7  ;;  %805 = vmatmul.mubr.f32.gmra.mxu1 %v600_v8 }
 0x115   : > { %724 = vmatprep.mubr.f32.mxu0 %v569_v9  ;;  %809 = vmatprep.mubr.f32.mxu1 %v603_v10 }
 0x118   : > { %725 = vmatmul.mubr.f32.gmra.mxu0 %v568_v11  ;;  %810 = vmatmul.mubr.f32.gmra.mxu1 %v602_v12 }
 0x119   : > { %729 = vmatprep.mubr.f32.mxu0 %v571_v13  ;;  %814 = vmatprep.mubr.f32.mxu1 %v605_v14 }
 0x11c   : > { %730 = vmatmul.mubr.f32.gmra.mxu0 %v570_v15  ;;  %815 = vmatmul.mubr.f32.gmra.mxu1 %v604_v17 }
 0x11d   : > { %734 = vmatprep.mubr.f32.mxu0 %v573_v18  ;;  %819 = vmatprep.mubr.f32.mxu1 %v607_v19 }
 0x120   : > { %735 = vmatmul.mubr.f32.gmra.mxu0 %v572_v20  ;;  %820 = vmatmul.mubr.f32.gmra.mxu1 %v606_v21 }
 0x121   : > { %739 = vmatprep.mubr.f32.mxu0 %v575_v22  ;;  %824 = vmatprep.mubr.f32.mxu1 %v609_v23 }
 0x124   : > { %740 = vmatmul.mubr.f32.gmra.mxu0 %v574_v24  ;;  %825 = vmatmul.mubr.f32.gmra.mxu1 %v608_v25 }
 0x125   : > { %744 = vmatprep.mubr.f32.mxu0 %v577_v26  ;;  %829 = vmatprep.mubr.f32.mxu1 %v611_v27 }
 0x128   : > { %745 = vmatmul.mubr.f32.gmra.mxu0 %v576_v28  ;;  %830 = vmatmul.mubr.f32.gmra.mxu1 %v610_v29 }
 0x129   : > { %749 = vmatprep.mubr.f32.mxu0 %v579_v30  ;;  %834 = vmatprep.mubr.f32.mxu1 %v613_v31 }
 0x12c   : > { %750 = vmatmul.mubr.f32.gmra.mxu0 %v578_v32  ;;  %835 = vmatmul.mubr.f32.gmra.mxu1 %v612_v33 }
 0x12d   : > { %754 = vmatprep.mubr.f32.mxu0 %v581_v34  ;;  %839 = vmatprep.mubr.f32.mxu1 %v615_v35 }
 0x130   : > { %755 = vmatmul.mubr.f32.gmra.mxu0 %v580_v36  ;;  %840 = vmatmul.mubr.f32.gmra.mxu1 %v614_v37 }
 0x131   : > { %759 = vmatprep.mubr.f32.mxu0 %v583_v38  ;;  %844 = vmatprep.mubr.f32.mxu1 %v617_v39 }
 0x134   : > { %760 = vmatmul.mubr.f32.gmra.mxu0 %v582_v40  ;;  %845 = vmatmul.mubr.f32.gmra.mxu1 %v616_v41 }
 0x135   : > { %764 = vmatprep.mubr.f32.mxu0 %v585_v42  ;;  %849 = vmatprep.mubr.f32.mxu1 %v619_v43 }
 0x138   : > { %765 = vmatmul.mubr.f32.gmra.mxu0 %v584_v44  ;;  %850 = vmatmul.mubr.f32.gmra.mxu1 %v618_v45 }
 0x1b8   : > { %v686_v46 = vpop.f32.mrf.mxu0  ;;  %v771_v16 = vpop.f32.mrf.mxu1 }
 0x1b9   : > { %855 = vst [vmem:[%s1632_s8] sm:$0xff] %v686_v46  ;;  %872 = vst [vmem:[%s1632_s8 + $0x88] sm:$0xff] %v771_v16 }
 0x1ba   : > { %v688_v47 = vpop.f32.mrf.mxu0  ;;  %v773_v48 = vpop.f32.mrf.mxu1 }
 0x1bc   : > { %v691_v49 = vpop.f32.mrf.mxu0  ;;  %v776_v50 = vpop.f32.mrf.mxu1 }
 0x1bd   : > { %856 = vst [vmem:[%s1632_s8 + $0x8] sm:$0xff] %v691_v49  ;;  %873 = vst [vmem:[%s1632_s8 + $0x90] sm:$0xff] %v776_v50 }
 0x1be   : > { %v693_v51 = vpop.f32.mrf.mxu0  ;;  %v778_v52 = vpop.f32.mrf.mxu1 }
 0x1c0   : > { %v696_v53 = vpop.f32.mrf.mxu0  ;;  %v781_v54 = vpop.f32.mrf.mxu1 }
 0x1c1   : > { %857 = vst [vmem:[%s1632_s8 + $0x10] sm:$0xff] %v696_v53  ;;  %874 = vst [vmem:[%s1632_s8 + $0x98] sm:$0xff] %v781_v54 }
 0x1c2   : > { %v698_v55 = vpop.f32.mrf.mxu0  ;;  %v783_v56 = vpop.f32.mrf.mxu1 }
 0x1c4   : > { %v701_v57 = vpop.f32.mrf.mxu0  ;;  %v786_v58 = vpop.f32.mrf.mxu1 }
 0x1c5   : > { %858 = vst [vmem:[%s1632_s8 + $0x18] sm:$0xff] %v701_v57  ;;  %875 = vst [vmem:[%s1632_s8 + $0xa0] sm:$0xff] %v786_v58 }
 0x1c6   : > { %v703_v59 = vpop.f32.mrf.mxu0  ;;  %v788_v60 = vpop.f32.mrf.mxu1 }
 0x1c8   : > { %v706_v61 = vpop.f32.mrf.mxu0  ;;  %v791_v62 = vpop.f32.mrf.mxu1 }
 0x1c9   : > { %859 = vst [vmem:[%s1632_s8 + $0x20] sm:$0xff] %v706_v61  ;;  %876 = vst [vmem:[%s1632_s8 + $0xa8] sm:$0xff] %v791_v62 }
 0x1ca   : > { %v708_v63 = vpop.f32.mrf.mxu0  ;;  %v793_v0 = vpop.f32.mrf.mxu1 }
 0x1cc   : > { %v711_v1 = vpop.f32.mrf.mxu0  ;;  %v796_v2 = vpop.f32.mrf.mxu1 }
 0x1cd   : > { %860 = vst [vmem:[%s1632_s8 + $0x28] sm:$0xff] %v711_v1  ;;  %877 = vst [vmem:[%s1632_s8 + $0xb0] sm:$0xff] %v796_v2 }
 0x1ce   : > { %v713_v3 = vpop.f32.mrf.mxu0  ;;  %v798_v4 = vpop.f32.mrf.mxu1 }
 0x1d0   : > { %v716_v5 = vpop.f32.mrf.mxu0  ;;  %v801_v6 = vpop.f32.mrf.mxu1 }
 0x1d1   : > { %861 = vst [vmem:[%s1632_s8 + $0x30] sm:$0xff] %v716_v5  ;;  %878 = vst [vmem:[%s1632_s8 + $0xb8] sm:$0xff] %v801_v6 }
 0x1d2   : > { %v718_v7 = vpop.f32.mrf.mxu0  ;;  %v803_v8 = vpop.f32.mrf.mxu1 }
 0x1d4   : > { %v721_v9 = vpop.f32.mrf.mxu0  ;;  %v806_v10 = vpop.f32.mrf.mxu1 }
 0x1d5   : > { %862 = vst [vmem:[%s1632_s8 + $0x38] sm:$0xff] %v721_v9  ;;  %879 = vst [vmem:[%s1632_s8 + $0xc0] sm:$0xff] %v806_v10 }
 0x1d6   : > { %v723_v11 = vpop.f32.mrf.mxu0  ;;  %v808_v12 = vpop.f32.mrf.mxu1 }
 0x1d8   : > { %v726_v13 = vpop.f32.mrf.mxu0  ;;  %v811_v14 = vpop.f32.mrf.mxu1 }
 0x1d9   : > { %863 = vst [vmem:[%s1632_s8 + $0x40] sm:$0xff] %v726_v13  ;;  %880 = vst [vmem:[%s1632_s8 + $0xc8] sm:$0xff] %v811_v14 }
 0x1da   : > { %v728_v15 = vpop.f32.mrf.mxu0  ;;  %v813_v17 = vpop.f32.mrf.mxu1 }
 0x1dc   : > { %v731_v18 = vpop.f32.mrf.mxu0  ;;  %v816_v19 = vpop.f32.mrf.mxu1 }
 0x1dd   : > { %864 = vst [vmem:[%s1632_s8 + $0x48] sm:$0xff] %v731_v18  ;;  %881 = vst [vmem:[%s1632_s8 + $0xd0] sm:$0xff] %v816_v19 }
 0x1de   : > { %v733_v20 = vpop.f32.mrf.mxu0  ;;  %v818_v21 = vpop.f32.mrf.mxu1 }
 0x1e0   : > { %v736_v22 = vpop.f32.mrf.mxu0  ;;  %v821_v23 = vpop.f32.mrf.mxu1 }
 0x1e1   : > { %865 = vst [vmem:[%s1632_s8 + $0x50] sm:$0xff] %v736_v22  ;;  %882 = vst [vmem:[%s1632_s8 + $0xd8] sm:$0xff] %v821_v23 }
 0x1e2   : > { %v738_v24 = vpop.f32.mrf.mxu0  ;;  %v823_v25 = vpop.f32.mrf.mxu1 }
 0x1e4   : > { %v741_v26 = vpop.f32.mrf.mxu0  ;;  %v826_v27 = vpop.f32.mrf.mxu1 }
 0x1e5   : > { %866 = vst [vmem:[%s1632_s8 + $0x58] sm:$0xff] %v741_v26  ;;  %883 = vst [vmem:[%s1632_s8 + $0xe0] sm:$0xff] %v826_v27 }
 0x1e6   : > { %v743_v28 = vpop.f32.mrf.mxu0  ;;  %v828_v29 = vpop.f32.mrf.mxu1 }
 0x1e8   : > { %v746_v30 = vpop.f32.mrf.mxu0  ;;  %v831_v31 = vpop.f32.mrf.mxu1 }
 0x1e9   : > { %867 = vst [vmem:[%s1632_s8 + $0x60] sm:$0xff] %v746_v30  ;;  %884 = vst [vmem:[%s1632_s8 + $0xe8] sm:$0xff] %v831_v31 }
 0x1ea   : > { %v748_v32 = vpop.f32.mrf.mxu0  ;;  %v833_v33 = vpop.f32.mrf.mxu1 }
 0x1ec   : > { %v751_v34 = vpop.f32.mrf.mxu0  ;;  %v836_v35 = vpop.f32.mrf.mxu1 }
 0x1ed   : > { %868 = vst [vmem:[%s1632_s8 + $0x68] sm:$0xff] %v751_v34  ;;  %885 = vst [vmem:[%s1632_s8 + $0xf0] sm:$0xff] %v836_v35 }
 0x1ee   : > { %v753_v36 = vpop.f32.mrf.mxu0  ;;  %v838_v37 = vpop.f32.mrf.mxu1 }
 0x1f0   : > { %v756_v38 = vpop.f32.mrf.mxu0  ;;  %v841_v39 = vpop.f32.mrf.mxu1 }
 0x1f1   : > { %869 = vst [vmem:[%s1632_s8 + $0x70] sm:$0xff] %v756_v38  ;;  %886 = vst [vmem:[%s1632_s8 + $0xf8] sm:$0xff] %v841_v39 }
 0x1f2   : > { %v758_v40 = vpop.f32.mrf.mxu0  ;;  %v843_v41 = vpop.f32.mrf.mxu1 }
 0x1f4   : > { %v761_v42 = vpop.f32.mrf.mxu0  ;;  %v846_v43 = vpop.f32.mrf.mxu1 }
 0x1f5   : > { %870 = vst [vmem:[%s1632_s8 + $0x78] sm:$0xff] %v761_v42  ;;  %887 = vst [vmem:[%s1632_s8 + $0x100] sm:$0xff] %v846_v43 }
 0x1f6   : > { %v763_v44 = vpop.f32.mrf.mxu0  ;;  %v848_v45 = vpop.f32.mrf.mxu1 }
 0x1f8   : > { %v766_v46 = vpop.f32.mrf.mxu0  ;;  %v851_v16 = vpop.f32.mrf.mxu1 }
 0x1f9   : > { %871 = vst [vmem:[%s1632_s8 + $0x80] sm:$0xff] %v766_v46  ;;  %888 = vst [vmem:[%s1632_s8 + $0x108] sm:$0xff] %v851_v16 }
 0x1fa   : > { %v768_v47 = vpop.f32.mrf.mxu0  ;;  %v853_v48 = vpop.f32.mrf.mxu1 }
 0x1fb PF: > { %s13_s16 = sadd.s32 1, %s1168_s16   ;;  %s1688_s12 = smov %s1156_s13 }
 0x1fc   : > { %p10_p10 = scmp.ge.s32.totalorder %s13_s16, 4   ;;  %s1689_s13 = smov %s1233_s21 }
 0x1fd   : > { %s1690_s14 = smov %s1164_s15  ;;  %s1691_s15 = smov %s1693_s17 }
 0x1fe   :  { %12 = sbr.rel (!%p10_p10) target bundleno = 3 (0x3), region = 151 }

</bundles_post_ra>
